<compile_context>
chip_gen: v6e
topology: v6e:2x2x1
jax: 0.10.0
libtpu: 0.0.40
codegen_flags: <defaults>
</compile_context>

<pallas_src>
import jax
import jax.numpy as jnp
from jax.experimental import pallas as pl
from jax.experimental.pallas import tpu as pltpu

# --- model dims (LearningPathEnv: 5 topics -> obs dim 5, 5 activities -> action dim 5)
INPUT_DIM = 5
HIDDEN_DIM = 64
OUTPUT_DIM = 5

# --- kernel-side layout constants
OUT_PAD = 8            # output lanes: 5 real + 3 zero; masked stores accepted (byte win dominates)
BATCH_TILE = 4096      # max batch rows per grid step (overhead amortization; VMEM is not the limit)
SPLIT_THRESHOLD = 512  # from this padded batch size on, use >=2 tiles (v7x dual-TC occupancy)

# packed f32 parameter layouts (every section starts on an 8-row boundary)
# p64  (88, 64): w1 rows [0:5) (rows 5:8 zero pad), w2 rows [8:72), b1 row 72, b2 row 80
W1_OFF, W2_OFF, B1_OFF, B2_OFF, P64_ROWS = 0, 8, 72, 80, 88
# pout (72, 8):  w3 rows [0:64) (cols 5:8 zero), b3 row 64 (cols 5:8 zero)
W3_OFF, B3_OFF, POUT_ROWS = 0, 64, 72


def dqn_kernel(x_ref, p64_ref, pout_ref, o_ref):
    # static, 8-aligned slices of the packed, VMEM-resident parameter buffers
    w1 = p64_ref[W1_OFF:W1_OFF + INPUT_DIM, :]         # (5, 64)  contract K=5 directly
    w2 = p64_ref[W2_OFF:W2_OFF + HIDDEN_DIM, :]        # (64, 64)
    b1 = p64_ref[B1_OFF:B1_OFF + 1, :]                 # (1, 64)
    b2 = p64_ref[B2_OFF:B2_OFF + 1, :]                 # (1, 64)
    w3 = pout_ref[W3_OFF:W3_OFF + HIDDEN_DIM, :]       # (64, 8)  cols 5:8 are zero
    b3 = pout_ref[B3_OFF:B3_OFF + 1, :]                # (1, 8)   cols 5:8 are zero

    # fc1 + relu
    h1 = jnp.dot(x_ref[...], w1, preferred_element_type=jnp.float32)
    h1 = jnp.maximum(h1 + b1, 0.0)
    # fc2 + relu
    h2 = jnp.dot(h1, w2, preferred_element_type=jnp.float32)
    h2 = jnp.maximum(h2 + b2, 0.0)
    # fc3 (no activation); output lanes 5:8 are exact zeros, sliced off in the wrapper
    o_ref[...] = jnp.dot(h2, w3, preferred_element_type=jnp.float32) + b3


def pack_params(params):
    """Pack (w1,b1,w2,b2,w3,b3) once, off the hot path, into two contiguous f32 buffers."""
    w1, b1, w2, b2, w3, b3 = params

    p64 = jnp.zeros((P64_ROWS, HIDDEN_DIM), jnp.float32)
    p64 = p64.at[W1_OFF:W1_OFF + INPUT_DIM, :].set(w1.astype(jnp.float32))
    p64 = p64.at[W2_OFF:W2_OFF + HIDDEN_DIM, :].set(w2.astype(jnp.float32))
    p64 = p64.at[B1_OFF, :].set(b1.astype(jnp.float32))
    p64 = p64.at[B2_OFF, :].set(b2.astype(jnp.float32))

    pout = jnp.zeros((POUT_ROWS, OUT_PAD), jnp.float32)
    pout = pout.at[W3_OFF:W3_OFF + HIDDEN_DIM, :OUTPUT_DIM].set(w3.astype(jnp.float32))
    pout = pout.at[B3_OFF, :OUTPUT_DIM].set(b3.astype(jnp.float32))
    return p64, pout


def _bucket_batch(batch):
    """Bucket batch sizes (powers of two up to BATCH_TILE, then multiples of it)
    so only a handful of distinct Mosaic kernels ever get compiled."""
    if batch <= BATCH_TILE:
        return max(8, pl.next_power_of_2(batch))
    return ((batch + BATCH_TILE - 1) // BATCH_TILE) * BATCH_TILE


def dqn_forward(x, packed_params):
    """x: (batch, INPUT_DIM) float32.  Returns (batch, OUTPUT_DIM) float32."""
    p64, pout = packed_params
    batch = x.shape[0]

    pad_batch = _bucket_batch(batch)
    # >= 2 tiles once the batch is non-trivial so v7x shards over both TensorCores;
    # otherwise one tile (grid-step overhead amortization dominates for small batches).
    tb = min(BATCH_TILE, pad_batch // 2) if pad_batch >= SPLIT_THRESHOLD else pad_batch
    grid = pad_batch // tb

    # only the batch dim is padded (no feature pad, no pad op at all for aligned batches)
    x_f = x.astype(jnp.float32)
    if pad_batch != batch:
        x_f = jnp.pad(x_f, ((0, pad_batch - batch), (0, 0)))

    flops = 2 * pad_batch * (INPUT_DIM * HIDDEN_DIM
                             + HIDDEN_DIM * HIDDEN_DIM
                             + HIDDEN_DIM * OUT_PAD)
    bytes_accessed = 4 * (pad_batch * INPUT_DIM + pad_batch * OUT_PAD
                          + P64_ROWS * HIDDEN_DIM + POUT_ROWS * OUT_PAD)

    out_p = pl.pallas_call(
        dqn_kernel,
        out_shape=jax.ShapeDtypeStruct((pad_batch, OUT_PAD), jnp.float32),
        grid=(grid,),
        in_specs=[
            pl.BlockSpec((tb, INPUT_DIM), lambda i: (i, 0)),            # x tiles stream (K=5, unpadded)
            pl.BlockSpec((P64_ROWS, HIDDEN_DIM), lambda i: (0, 0)),     # params stay resident
            pl.BlockSpec((POUT_ROWS, OUT_PAD), lambda i: (0, 0)),
        ],
        out_specs=pl.BlockSpec((tb, OUT_PAD), lambda i: (i, 0)),        # narrow 8-lane output
        compiler_params=pltpu.CompilerParams(
            dimension_semantics=("parallel",),   # v7x: batch tiles over both TCs
        ),
        cost_estimate=pl.CostEstimate(
            flops=flops, transcendentals=0, bytes_accessed=bytes_accessed),
    )(x_f, p64, pout)

    return out_p[:batch, :OUTPUT_DIM]


def init_params(key):
    """Deterministic init mimicking PyTorch nn.Linear (U(-1/sqrt(fan_in), +1/sqrt(fan_in)))."""
    ks = jax.random.split(key, 6)

    def linear(kw, kb, fan_in, fan_out):
        bound = 1.0 / jnp.sqrt(float(fan_in))
        w = jax.random.uniform(kw, (fan_in, fan_out), jnp.float32, -bound, bound)
        b = jax.random.uniform(kb, (fan_out,), jnp.float32, -bound, bound)
        return w, b

    w1, b1 = linear(ks[0], ks[1], INPUT_DIM, HIDDEN_DIM)
    w2, b2 = linear(ks[2], ks[3], HIDDEN_DIM, HIDDEN_DIM)
    w3, b3 = linear(ks[4], ks[5], HIDDEN_DIM, OUTPUT_DIM)
    return (w1, b1, w2, b2, w3, b3)


def dqn_reference(x, params):
    w1, b1, w2, b2, w3, b3 = params
    h1 = jnp.maximum(x @ w1 + b1, 0.0)
    h2 = jnp.maximum(h1 @ w2 + b2, 0.0)
    return h2 @ w3 + b3


if __name__ == "__main__":
    key = jax.random.PRNGKey(0)
    k_params, k_x1, k_x2 = jax.random.split(key, 3)

    params = init_params(k_params)
    packed = pack_params(params)          # packing done once, off the hot path

    # small action-selection batch: 2 observations of the 5-topic state in [0, 100)
    x_small = jax.random.uniform(k_x1, (2, INPUT_DIM), jnp.float32, 0.0, 100.0)
    out_small = jax.block_until_ready(dqn_forward(x_small, packed))
    ref_small = dqn_reference(x_small, params)
    assert out_small.shape == (2, OUTPUT_DIM)
    assert jnp.allclose(out_small, ref_small, atol=1e-3, rtol=1e-4)

    # replay-style batch: buckets to 1024 rows -> 2 tiles of 512 (exercises the parallel grid)
    x_big = jax.random.uniform(k_x2, (700, INPUT_DIM), jnp.float32, 0.0, 100.0)
    out_big = jax.block_until_ready(dqn_forward(x_big, packed))
    ref_big = dqn_reference(x_big, params)
    assert out_big.shape == (700, OUTPUT_DIM)
    assert jnp.allclose(out_big, ref_big, atol=1e-3, rtol=1e-4)

    print("KERNEL_OK")
</pallas_src>

<mosaic_0001>
module attributes {stable_mosaic.version = 11 : i64} {
  func.func @dqn_kernel(%arg0: i32, %arg1: memref<8x5xf32, #tpu.memory_space<vmem>>, %arg2: memref<88x64xf32, #tpu.memory_space<vmem>>, %arg3: memref<72x8xf32, #tpu.memory_space<vmem>>, %arg4: memref<8x8xf32, #tpu.memory_space<vmem>>) attributes {dimension_semantics = [#tpu.dimension_semantics<parallel>], iteration_bounds = array<i64: 1>, scalar_prefetch = 0 : i64, scratch_operands = 0 : i64, tpu.core_type = #tpu.core_type<tc>, window_params = [{transform_indices = @transform_0, window_bounds = array<i64: 8, 5>}, {pipeline_mode = #tpu.pipeline_mode<synchronous>, transform_indices = @transform_1, window_bounds = array<i64: 88, 64>}, {pipeline_mode = #tpu.pipeline_mode<synchronous>, transform_indices = @transform_2, window_bounds = array<i64: 72, 8>}, {transform_indices = @transform_3, window_bounds = array<i64: 8, 8>}]} {
    %c0 = arith.constant 0 : index
    %c0_0 = arith.constant 0 : index
    %0 = vector.load %arg2[%c0, %c0_0] : memref<88x64xf32, #tpu.memory_space<vmem>>, vector<5x64xf32>
    %c8 = arith.constant 8 : index
    %c0_1 = arith.constant 0 : index
    %1 = vector.load %arg2[%c8, %c0_1] : memref<88x64xf32, #tpu.memory_space<vmem>>, vector<64x64xf32>
    %c72 = arith.constant 72 : index
    %c0_2 = arith.constant 0 : index
    %2 = vector.load %arg2[%c72, %c0_2] : memref<88x64xf32, #tpu.memory_space<vmem>>, vector<1x64xf32>
    %c80 = arith.constant 80 : index
    %c0_3 = arith.constant 0 : index
    %3 = vector.load %arg2[%c80, %c0_3] : memref<88x64xf32, #tpu.memory_space<vmem>>, vector<1x64xf32>
    %c0_4 = arith.constant 0 : index
    %c0_5 = arith.constant 0 : index
    %4 = vector.load %arg3[%c0_4, %c0_5] : memref<72x8xf32, #tpu.memory_space<vmem>>, vector<64x8xf32>
    %c64 = arith.constant 64 : index
    %c0_6 = arith.constant 0 : index
    %5 = vector.load %arg3[%c64, %c0_6] : memref<72x8xf32, #tpu.memory_space<vmem>>, vector<1x8xf32>
    %c0_7 = arith.constant 0 : index
    %c0_8 = arith.constant 0 : index
    %6 = vector.load %arg1[%c0_7, %c0_8] : memref<8x5xf32, #tpu.memory_space<vmem>>, vector<8x5xf32>
    %cst = arith.constant dense<0.000000e+00> : vector<8x64xf32>
    %7 = tpu.matmul %6, %0, %cst {dimension_numbers = #tpu.dot_dimension_numbers<[1], [0], [0], [1], [0, 0, 1, 1], [], []>} : vector<8x5xf32>, vector<5x64xf32>, vector<8x64xf32> -> vector<8x64xf32>
    %8 = vector.broadcast %2 : vector<1x64xf32> to vector<8x64xf32>
    %9 = arith.addf %7, %8 : vector<8x64xf32>
    %cst_9 = arith.constant 0.000000e+00 : f32
    %10 = vector.broadcast %cst_9 : f32 to vector<8x64xf32>
    %11 = arith.maximumf %9, %10 : vector<8x64xf32>
    %cst_10 = arith.constant dense<0.000000e+00> : vector<8x64xf32>
    %12 = tpu.matmul %11, %1, %cst_10 {dimension_numbers = #tpu.dot_dimension_numbers<[1], [0], [0], [1], [0, 0, 1, 1], [], []>} : vector<8x64xf32>, vector<64x64xf32>, vector<8x64xf32> -> vector<8x64xf32>
    %13 = vector.broadcast %3 : vector<1x64xf32> to vector<8x64xf32>
    %14 = arith.addf %12, %13 : vector<8x64xf32>
    %cst_11 = arith.constant 0.000000e+00 : f32
    %15 = vector.broadcast %cst_11 : f32 to vector<8x64xf32>
    %16 = arith.maximumf %14, %15 : vector<8x64xf32>
    %cst_12 = arith.constant dense<0.000000e+00> : vector<8x8xf32>
    %17 = tpu.matmul %16, %4, %cst_12 {dimension_numbers = #tpu.dot_dimension_numbers<[1], [0], [0], [1], [0, 0, 1, 1], [], []>} : vector<8x64xf32>, vector<64x8xf32>, vector<8x8xf32> -> vector<8x8xf32>
    %18 = vector.broadcast %5 : vector<1x8xf32> to vector<8x8xf32>
    %19 = arith.addf %17, %18 : vector<8x8xf32>
    %c0_13 = arith.constant 0 : index
    %c0_14 = arith.constant 0 : index
    %20 = vector.load %arg4[%c0_13, %c0_14] : memref<8x8xf32, #tpu.memory_space<vmem>>, vector<8x8xf32>
    tpu.vector_store %arg4[%c0_13, %c0_14], %19 {strides = array<i32>} : memref<8x8xf32, #tpu.memory_space<vmem>>, vector<8x8xf32>,
    return
  }
  func.func @transform_0(%arg0: i32) -> (i32, i32) {
    %c0_i32 = arith.constant 0 : i32
    %c0_i32_0 = arith.constant 0 : i32
    return %arg0, %c0_i32 : i32, i32
  }
  func.func @transform_1(%arg0: i32) -> (i32, i32) {
    %c0_i32 = arith.constant 0 : i32
    %c0_i32_0 = arith.constant 0 : i32
    %c0_i32_1 = arith.constant 0 : i32
    return %c0_i32, %c0_i32_0 : i32, i32
  }
  func.func @transform_2(%arg0: i32) -> (i32, i32) {
    %c0_i32 = arith.constant 0 : i32
    %c0_i32_0 = arith.constant 0 : i32
    %c0_i32_1 = arith.constant 0 : i32
    return %c0_i32, %c0_i32_0 : i32, i32
  }
  func.func @transform_3(%arg0: i32) -> (i32, i32) {
    %c0_i32 = arith.constant 0 : i32
    %c0_i32_0 = arith.constant 0 : i32
    return %arg0, %c0_i32 : i32, i32
  }
}

</mosaic_0001>

<bundles_post_ra>
// kernel: tpu_custom_call.1
= control target key start
LH: loop header
LB: loop body
LE: loop exit
PB: predicated region body
PF: predicated region fallthrough
CT: control target
= control target key end

     0   :  { %vm44_vm0 = vcmask 1044480   ;;  %v386_v2 = vmov 0.0   ;;  %vm387_vm1 = vmmov 0   ;;  %vm40_vm2 = vcmask 39936   ;;  %s480_s0 = inlined_call_operand.vmem [shape: f32[8,5], index: 0, kind: input, shape index: {}]   ;;  %s481_s1 = inlined_call_operand.vmem [shape: f32[88,64], index: 1, kind: input, shape index: {}]   ;;  %s482_s2 = inlined_call_operand.vmem [shape: f32[72,8], index: 2, kind: input, shape index: {}]   ;;  %s483_s3 = inlined_call_operand.hbm [shape: f32[8,8], index: 3, kind: output, shape index: {}]  }
   0x1   :  { %v15_v0 = vld [vmem:[%s481_s1] sm:$0x1f]  ;;  %318 = vmatprep.subr.mxu0 %v386_v2  ;;  %320 = vmatprep.mubr.msk.f32.mxu0 %vm387_vm1, %v386_v2  ;;  %v22_v4 = vld [vmem:[%s481_s1 + $0x38] sm:$0xff] }
   0x2   :  { %v35_v1 = vld [vmem:[%s480_s0] sm:$0xff]  ;;  %319 = vmatpush3.msk.msra.mxu0 %vm44_vm0, %v15_v0  ;;  %323 = vmatprep.subr.mxu1 %v386_v2 }
   0x3   :  { %v23_v3 = vld [vmem:[%s481_s1 + $0x40] sm:$0xff]  ;;  %321 = vmatmul.mubr.msk.f32.vlgmr.msra.gmra.mxu0 %vm40_vm2, %v35_v1 }
   0x4   :  { %324 = vmatpush3.msra.mxu1 %v23_v3 }
   0x5   :  { %8 = vsyncpa [#allocation3], 0  ;;  %325 = vmatprep.subr.mxu1 %v386_v2  ;;  %v21_v5 = vld [vmem:[%s481_s1 + $0x30] sm:$0xff]  ;;  %339 = vmatprep.mubr.msk.f32.mxu1 %vm387_vm1, %v386_v2  ;;  %v20_v6 = vld [vmem:[%s481_s1 + $0x28] sm:$0xff]  ;;  %vm123_vm3 = vcmask 523264   ;;  %s388_s25 = smov [#allocation2]  }
   0x6   :  { %326 = vmatpush3.msra.mxu1 %v22_v4  ;;  %342 = vmatprep.subr.mxu0 %v386_v2  ;;  %v19_v7 = vld [vmem:[%s481_s1 + $0x20] sm:$0xff]  ;;  %v18_v8 = vld [vmem:[%s481_s1 + $0x18] sm:$0xff]  ;;  %v17_v9 = vld [vmem:[%s481_s1 + $0x10] sm:$0xff]  ;;  %s283_s26 = sshll.u32 %s388_s25, 4  ;;  %vm275_vm4 = vcmask 64512   ;;  %s284_s26 = int_to_ptr.vmem [resolvable:$true] %s283_s26 }
   0x7   :  { %327 = vmatprep.subr.mxu1 %v386_v2  ;;  %358 = vmatprep.mubr.msk.f32.mxu0 %vm387_vm1, %v386_v2  ;;  %v16_v10 = vld [vmem:[%s481_s1 + $0x8] sm:$0xff]  ;;  %v33_v11 = vld [vmem:[%s482_s2 + $0x38] sm:$0xff]  ;;  %v32_v12 = vld [vmem:[%s482_s2 + $0x30] sm:$0xff]  ;;  %s364_s27 = scalar_lea.vmem %s284_s26, 128  ;;  %p369_p1 = scmp.lt.s32.totalorder %s284_s26, %s284_s26 }
   0x8   :  { %328 = vmatpush3.msra.mxu1 %v21_v5  ;;  %343 = vmatpush3.msra.mxu0 %v33_v11  ;;  %v31_v13 = vld [vmem:[%s482_s2 + $0x28] sm:$0xff]  ;;  %v30_v14 = vld [vmem:[%s482_s2 + $0x20] sm:$0xff]  ;;  %v29_v15 = vld [vmem:[%s482_s2 + $0x18] sm:$0xff]  ;;  %p365_p0 = scmp.ne.s32.totalorder %s284_s26, %s364_s27  ;;  %p370_p2 = scmp.lt.s32.totalorder %s364_s27, %s364_s27 }
   0x9   :  { %329 = vmatprep.subr.mxu1 %v386_v2  ;;  %344 = vmatprep.subr.mxu0 %v386_v2  ;;  %v291_v16 = vld [vmem:[%s481_s1 + $0x48] ss:$0 sm:$0xff]  ;;  %v28_v21 = vld [vmem:[%s482_s2 + $0x10] sm:$0xff]  ;;  %v26_v23 = vld [vmem:[%s482_s2] sm:$0xff] }
   0xa   :  { %330 = vmatpush3.msra.mxu1 %v20_v6  ;;  %345 = vmatpush3.msra.mxu0 %v32_v12  ;;  %v27_v22 = vld [vmem:[%s482_s2 + $0x8] sm:$0xff]  ;;  %v294_v24 = vld [vmem:[%s481_s1 + $0x50] ss:$0 sm:$0xff]  ;;  %v296_v29 = vld [vmem:[%s482_s2 + $0x40] ss:$0 sm:$0xff]  ;;  %p371_p3 = por %p370_p2, %p369_p1 }
   0xb   :  { %331 = vmatprep.subr.mxu1 %v386_v2  ;;  %346 = vmatprep.subr.mxu0 %v386_v2 }
   0xc   :  { %332 = vmatpush3.msra.mxu1 %v19_v7  ;;  %347 = vmatpush3.msra.mxu0 %v31_v13  ;;  %p372_p4 = pnand %p371_p3, %p365_p0 }
   0xd   :  { %333 = vmatprep.subr.mxu1 %v386_v2  ;;  %348 = vmatprep.subr.mxu0 %v386_v2 }
   0xe   :  { %334 = vmatpush3.msra.mxu1 %v18_v8  ;;  %349 = vmatpush3.msra.mxu0 %v30_v14 }
   0xf   :  { %335 = vmatprep.subr.mxu1 %v386_v2  ;;  %350 = vmatprep.subr.mxu0 %v386_v2 }
  0x10   :  { %336 = vmatpush3.msra.mxu1 %v17_v9  ;;  %351 = vmatpush3.msra.mxu0 %v29_v15 }
  0x11   :  { %337 = vmatprep.subr.mxu1 %v386_v2  ;;  %352 = vmatprep.subr.mxu0 %v386_v2 }
  0x12   :  { %338 = vmatpush3.msra.mxu1 %v16_v10  ;;  %353 = vmatpush3.msra.mxu0 %v28_v21 }
  0x13   :  { %354 = vmatprep.subr.mxu0 %v386_v2 }
  0x14   :  { %355 = vmatpush3.msra.mxu0 %v27_v22 }
  0x15   :  { %356 = vmatprep.subr.mxu0 %v386_v2 }
  0x16   :  { %357 = vmatpush3.msra.mxu0 %v26_v23 }
  0xc3   :  { %v114_v17 = vpop.f32.mrf.mxu0 }
  0xc4   :  { %v115_v18 = vadd.f32 %v291_v16, %v114_v17 }
  0xc5   :  { %v322_v19 = vpop.f32.mrf.mxu0 }
  0xc6   :  { %v118_v20 = vmax.f32 %v115_v18, 0.0 }
  0xc8   :  { %340 = vmatmul.mubr.msk.f32.vlgmr.msra.gmra.mxu1 %vm123_vm3, %v118_v20 }
 0x188   :  { %v193_v25 = vpop.f32.mrf.mxu1 }
 0x189   :  { %v194_v26 = vadd.f32 %v294_v24, %v193_v25 }
 0x18a   :  { %v341_v27 = vpop.f32.mrf.mxu1 }
 0x18b   :  { %v197_v28 = vmax.f32 %v194_v26, 0.0 }
 0x18d   :  { %359 = vmatmul.mubr.msk.f32.vlgmr.msra.gmra.mxu0 %vm123_vm3, %v197_v28 }
 0x24d   :  { %v271_v30 = vpop.f32.mrf.mxu0 }
 0x24e   :  { %v272_v31 = vadd.f32 %v296_v29, %v271_v30 }
 0x24f   :  { %v360_v32 = vpop.f32.mrf.mxu0 }
 0x250   :  { %276 = vst.msk [vmem:[#allocation2] sm:$0xff] %vm275_vm4, %v272_v31 }
 0x251   :  { %375 = shalt.err (!%p372_p4)
}
 0x252   :  { %286 = dma.vmem_to_hbm [thread:$0]  %s284_s26, 128, %s483_s3, [#allocation3]  }
 0x253   :  { %384 = dma.done.wait [#allocation3], 128  }
 0x254   :  { %385 = vsyncadd [#allocation3], 4294967168 }
 0x255   :  { %290 = vsyncpa [#allocation3], 1 }

</bundles_post_ra>
